<compile_context>
chip_gen: v6e
topology: v6e:2x2x1
jax: 0.10.0
libtpu: 0.0.40
codegen_flags: <defaults>
</compile_context>

<pallas_src>
import functools

import jax
import jax.numpy as jnp
from jax import lax
from jax.experimental import pallas as pl
from jax.experimental.pallas import tpu as pltpu

EPS = 1e-5
HIDDEN = 128  # fixed by the module: nn.Linear(latent_dim, 128)


def _round_up(n, m):
    return ((n + m - 1) // m) * m


def simclr_head_kernel(x_ref, w1_ref, w2_ref, p_ref, o_ref, acc_ref, *, hid, hp):
    k = pl.program_id(0)

    @pl.when(k == 0)
    def _init():
        acc_ref[...] = jnp.zeros_like(acc_ref)

    # ---- Linear(latent_dim, 128), K-tiled: bf16 MXU inputs, f32 accumulation ----
    acc_ref[...] += jnp.dot(x_ref[...], w1_ref[...],
                            preferred_element_type=jnp.float32)

    @pl.when(k == pl.num_programs(0) - 1)
    def _epilogue():
        p = p_ref[...]
        b1, g1, beta1 = p[0:1, :hid], p[1:2, :hid], p[2:3, :hid]
        g2, beta2 = p[3:4, :hp], p[4:5, :hp]

        # ---- BatchNorm1d(128), training-mode batch statistics ----
        h = acc_ref[...] + b1
        mu1 = jnp.mean(h, axis=0, keepdims=True)
        d1 = h - mu1
        var1 = jnp.mean(d1 * d1, axis=0, keepdims=True)
        h = d1 * lax.rsqrt(var1 + EPS) * g1 + beta1

        # ---- ReLU ----
        h = jnp.maximum(h, 0.0)

        # ---- Linear(128, head_dim, bias=False): bf16 MXU, f32 accumulation ----
        z = jnp.dot(h.astype(jnp.bfloat16), w2_ref[...],
                    preferred_element_type=jnp.float32)

        # ---- BatchNorm1d(head_dim), training-mode batch statistics ----
        mu2 = jnp.mean(z, axis=0, keepdims=True)
        d2 = z - mu2
        var2 = jnp.mean(d2 * d2, axis=0, keepdims=True)
        o_ref[...] = (d2 * lax.rsqrt(var2 + EPS) * g2 + beta2).astype(o_ref.dtype)


def simclr_head(x, params, *, tk=512):
    """x: (B, ...) input (flattened to (B, latent_dim)). params: see init_params."""
    x = x.reshape(x.shape[0], -1)          # torch.flatten(x, 1)
    B, K = x.shape
    w1, w2 = params["w1"], params["w2"]    # (K, 128), (128, head_dim)
    hid = w1.shape[1]
    head_dim = w2.shape[1]

    hp = _round_up(head_dim, 128)          # lane-dense output / full MXU-N
    wmax = max(hid, hp)
    tk = min(tk, _round_up(K, 128))        # tk must be a multiple of 128
    kp = _round_up(K, tk)
    n_k = kp // tk

    # bf16 matmul operands (zero-padded K / head_dim columns contribute nothing).
    xb = jnp.pad(x, ((0, 0), (0, kp - K))).astype(jnp.bfloat16)
    w1b = jnp.pad(w1, ((0, kp - K), (0, 0))).astype(jnp.bfloat16)
    w2b = jnp.pad(w2, ((0, 0), (0, hp - head_dim))).astype(jnp.bfloat16)

    # Pack b1/g1/beta1/g2/beta2 into one (8, wmax) f32 slab -> single DMA.
    slab = jnp.zeros((8, wmax), jnp.float32)
    slab = slab.at[0, :hid].set(params["b1"].reshape(-1))
    slab = slab.at[1, :hid].set(params["g1"].reshape(-1))
    slab = slab.at[2, :hid].set(params["beta1"].reshape(-1))
    slab = slab.at[3, :head_dim].set(params["g2"].reshape(-1))
    slab = slab.at[4, :head_dim].set(params["beta2"].reshape(-1))

    kernel = functools.partial(simclr_head_kernel, hid=hid, hp=hp)

    out_p = pl.pallas_call(
        kernel,
        out_shape=jax.ShapeDtypeStruct((B, hp), jnp.float32),
        grid_spec=pltpu.PrefetchScalarGridSpec(
            num_scalar_prefetch=0,
            grid=(n_k,),
            in_specs=[
                pl.BlockSpec((B, tk), lambda k: (0, k)),     # x: streamed K tiles
                pl.BlockSpec((tk, hid), lambda k: (k, 0)),   # w1: streamed K tiles
                pl.BlockSpec((hid, hp), lambda k: (0, 0)),   # w2: resident (1 DMA)
                pl.BlockSpec((8, wmax), lambda k: (0, 0)),   # packed BN params
            ],
            out_specs=pl.BlockSpec((B, hp), lambda k: (0, 0)),
            scratch_shapes=[pltpu.VMEM((B, hid), jnp.float32)],  # h accumulator
        ),
        compiler_params=pltpu.CompilerParams(
            dimension_semantics=("arbitrary",),     # K is a reduction axis
            vmem_limit_bytes=32 * 1024 * 1024,
        ),
    )(xb, w1b, w2b, slab)

    return out_p[:, :head_dim]


def init_params(key, latent_dim, head_dim, hidden=HIDDEN):
    """Deterministic synthetic parameters matching the PyTorch module's shapes."""
    k1, k2, k3, k4, k5, k6, k7 = jax.random.split(key, 7)
    # PyTorch Linear stores (out, in); pre-transpose to (in, out) for x @ W.
    w1 = (jax.random.normal(k1, (hidden, latent_dim), jnp.float32) * 0.1).T
    b1 = jax.random.normal(k2, (1, hidden), jnp.float32) * 0.1
    g1 = 1.0 + jax.random.normal(k3, (1, hidden), jnp.float32) * 0.05
    beta1 = jax.random.normal(k4, (1, hidden), jnp.float32) * 0.05
    w2 = (jax.random.normal(k5, (head_dim, hidden), jnp.float32) * 0.1).T
    g2 = 1.0 + jax.random.normal(k6, (1, head_dim), jnp.float32) * 0.05
    beta2 = jax.random.normal(k7, (1, head_dim), jnp.float32) * 0.05
    return dict(w1=w1, b1=b1, g1=g1, beta1=beta1, w2=w2, g2=g2, beta2=beta2)


def reference(x, p):
    """Pure-JAX reference mirroring the kernel's math (bf16 MXU inputs, f32 acc)."""
    h = jnp.dot(x.astype(jnp.bfloat16), p["w1"].astype(jnp.bfloat16),
                preferred_element_type=jnp.float32) + p["b1"]
    mu = h.mean(0, keepdims=True)
    var = ((h - mu) ** 2).mean(0, keepdims=True)
    h = (h - mu) * lax.rsqrt(var + EPS) * p["g1"] + p["beta1"]
    h = jnp.maximum(h, 0.0)
    z = jnp.dot(h.astype(jnp.bfloat16), p["w2"].astype(jnp.bfloat16),
                preferred_element_type=jnp.float32)
    mu2 = z.mean(0, keepdims=True)
    var2 = ((z - mu2) ** 2).mean(0, keepdims=True)
    return (z - mu2) * lax.rsqrt(var2 + EPS) * p["g2"] + p["beta2"]


if __name__ == "__main__":
    key = jax.random.PRNGKey(0)
    kx, kp = jax.random.split(key)

    B, C, H, W = 8, 4, 16, 16          # latent_dim = C*H*W = 1024
    latent_dim = C * H * W
    head_dim = 64                       # exercises the lane-padding path (64 -> 128)

    x_nchw = jax.random.normal(kx, (B, C, H, W), jnp.float32)
    params = init_params(kp, latent_dim, head_dim)

    out = jax.block_until_ready(simclr_head(x_nchw, params))
    ref = reference(x_nchw.reshape(B, -1), params)

    assert out.shape == (B, head_dim)
    err = jnp.max(jnp.abs(out - ref))
    assert jnp.allclose(out, ref, atol=2e-3, rtol=2e-3), f"mismatch vs reference: {err}"

    print("KERNEL_OK")
</pallas_src>

<mosaic_0001>
module attributes {stable_mosaic.version = 11 : i64} {
  func.func @simclr_head_kernel(%arg0: i32, %arg1: memref<8x512xbf16, #tpu.memory_space<vmem>>, %arg2: memref<512x128xbf16, #tpu.memory_space<vmem>>, %arg3: memref<128x128xbf16, #tpu.memory_space<vmem>>, %arg4: memref<8x128xf32, #tpu.memory_space<vmem>>, %arg5: memref<8x128xf32, #tpu.memory_space<vmem>>, %arg6: memref<8x128xf32, #tpu.memory_space<vmem>>) attributes {dimension_semantics = [#tpu.dimension_semantics<arbitrary>], iteration_bounds = array<i64: 2>, scalar_prefetch = 0 : i64, scratch_operands = 1 : i64, tpu.core_type = #tpu.core_type<tc>, window_params = [{transform_indices = @transform_0, window_bounds = array<i64: 8, 512>}, {transform_indices = @transform_1, window_bounds = array<i64: 512, 128>}, {pipeline_mode = #tpu.pipeline_mode<synchronous>, transform_indices = @transform_2, window_bounds = array<i64: 128, 128>}, {pipeline_mode = #tpu.pipeline_mode<synchronous>, transform_indices = @transform_3, window_bounds = array<i64: 8, 128>}, {pipeline_mode = #tpu.pipeline_mode<synchronous>, transform_indices = @transform_4, window_bounds = array<i64: 8, 128>}]} {
    %c0_i32 = arith.constant 0 : i32
    %0 = arith.cmpi eq, %arg0, %c0_i32 : i32
    %1 = arith.extui %0 : i1 to i32
    %c0_i32_0 = arith.constant 0 : i32
    %2 = arith.cmpi ne, %1, %c0_i32_0 : i32
    scf.if %2 {
      %cst_9 = arith.constant 0.000000e+00 : f32
      %12 = vector.broadcast %cst_9 : f32 to vector<8x128xf32>
      %c0_10 = arith.constant 0 : index
      %c0_11 = arith.constant 0 : index
      %13 = vector.load %arg6[%c0_10, %c0_11] : memref<8x128xf32, #tpu.memory_space<vmem>>, vector<8x128xf32>
      tpu.vector_store %arg6[%c0_10, %c0_11], %12 {strides = array<i32>} : memref<8x128xf32, #tpu.memory_space<vmem>>, vector<8x128xf32>,
    } else {
    }
    %c0 = arith.constant 0 : index
    %c0_1 = arith.constant 0 : index
    %3 = vector.load %arg6[%c0, %c0_1] : memref<8x128xf32, #tpu.memory_space<vmem>>, vector<8x128xf32>
    %c0_2 = arith.constant 0 : index
    %c0_3 = arith.constant 0 : index
    %4 = vector.load %arg1[%c0_2, %c0_3] : memref<8x512xbf16, #tpu.memory_space<vmem>>, vector<8x512xbf16>
    %c0_4 = arith.constant 0 : index
    %c0_5 = arith.constant 0 : index
    %5 = vector.load %arg2[%c0_4, %c0_5] : memref<512x128xbf16, #tpu.memory_space<vmem>>, vector<512x128xbf16>
    %cst = arith.constant dense<0.000000e+00> : vector<8x128xf32>
    %6 = tpu.matmul %4, %5, %cst {dimension_numbers = #tpu.dot_dimension_numbers<[1], [0], [0], [1], [0, 0, 1, 1], [], []>} : vector<8x512xbf16>, vector<512x128xbf16>, vector<8x128xf32> -> vector<8x128xf32>
    %7 = arith.addf %3, %6 : vector<8x128xf32>
    %c0_6 = arith.constant 0 : index
    %c0_7 = arith.constant 0 : index
    %8 = vector.load %arg6[%c0_6, %c0_7] : memref<8x128xf32, #tpu.memory_space<vmem>>, vector<8x128xf32>
    tpu.vector_store %arg6[%c0_6, %c0_7], %7 {strides = array<i32>} : memref<8x128xf32, #tpu.memory_space<vmem>>, vector<8x128xf32>,
    %c1_i32 = arith.constant 1 : i32
    %9 = arith.cmpi eq, %arg0, %c1_i32 : i32
    %10 = arith.extui %9 : i1 to i32
    %c0_i32_8 = arith.constant 0 : i32
    %11 = arith.cmpi ne, %10, %c0_i32_8 : i32
    scf.if %11 {
      %c0_9 = arith.constant 0 : index
      %c0_10 = arith.constant 0 : index
      %12 = vector.load %arg4[%c0_9, %c0_10] : memref<8x128xf32, #tpu.memory_space<vmem>>, vector<8x128xf32>
      %13 = vector.extract_strided_slice %12 {offsets = [0, 0], sizes = [1, 128], strides = [1, 1]} : vector<8x128xf32> to vector<1x128xf32>
      %14 = vector.extract_strided_slice %12 {offsets = [1, 0], sizes = [1, 128], strides = [1, 1]} : vector<8x128xf32> to vector<1x128xf32>
      %15 = vector.extract_strided_slice %12 {offsets = [2, 0], sizes = [1, 128], strides = [1, 1]} : vector<8x128xf32> to vector<1x128xf32>
      %16 = vector.extract_strided_slice %12 {offsets = [3, 0], sizes = [1, 128], strides = [1, 1]} : vector<8x128xf32> to vector<1x128xf32>
      %17 = vector.extract_strided_slice %12 {offsets = [4, 0], sizes = [1, 128], strides = [1, 1]} : vector<8x128xf32> to vector<1x128xf32>
      %c0_11 = arith.constant 0 : index
      %c0_12 = arith.constant 0 : index
      %18 = vector.load %arg6[%c0_11, %c0_12] : memref<8x128xf32, #tpu.memory_space<vmem>>, vector<8x128xf32>
      %19 = vector.broadcast %13 : vector<1x128xf32> to vector<8x128xf32>
      %20 = arith.addf %18, %19 : vector<8x128xf32>
      %cst_13 = arith.constant dense<0.000000e+00> : vector<128xf32>
      %21 = vector.multi_reduction <add>, %20, %cst_13 [0] : vector<8x128xf32> to vector<128xf32>
      %22 = vector.shape_cast %21 : vector<128xf32> to vector<1x128xf32>
      %cst_14 = arith.constant 8.000000e+00 : f32
      %23 = vector.broadcast %cst_14 : f32 to vector<1x128xf32>
      %24 = arith.divf %22, %23 : vector<1x128xf32>
      %25 = vector.broadcast %24 : vector<1x128xf32> to vector<8x128xf32>
      %26 = arith.subf %20, %25 : vector<8x128xf32>
      %27 = arith.mulf %26, %26 : vector<8x128xf32>
      %cst_15 = arith.constant dense<0.000000e+00> : vector<128xf32>
      %28 = vector.multi_reduction <add>, %27, %cst_15 [0] : vector<8x128xf32> to vector<128xf32>
      %29 = vector.shape_cast %28 : vector<128xf32> to vector<1x128xf32>
      %cst_16 = arith.constant 8.000000e+00 : f32
      %30 = vector.broadcast %cst_16 : f32 to vector<1x128xf32>
      %31 = arith.divf %29, %30 : vector<1x128xf32>
      %cst_17 = arith.constant 9.99999974E-6 : f32
      %32 = vector.broadcast %cst_17 : f32 to vector<1x128xf32>
      %33 = arith.addf %31, %32 : vector<1x128xf32>
      %34 = math.rsqrt %33 : vector<1x128xf32>
      %35 = vector.broadcast %34 : vector<1x128xf32> to vector<8x128xf32>
      %36 = arith.mulf %26, %35 : vector<8x128xf32>
      %37 = vector.broadcast %14 : vector<1x128xf32> to vector<8x128xf32>
      %38 = arith.mulf %36, %37 : vector<8x128xf32>
      %39 = vector.broadcast %15 : vector<1x128xf32> to vector<8x128xf32>
      %40 = arith.addf %38, %39 : vector<8x128xf32>
      %cst_18 = arith.constant 0.000000e+00 : f32
      %41 = vector.broadcast %cst_18 : f32 to vector<8x128xf32>
      %42 = arith.maximumf %40, %41 : vector<8x128xf32>
      %43 = arith.truncf %42 : vector<8x128xf32> to vector<8x128xbf16>
      %c0_19 = arith.constant 0 : index
      %c0_20 = arith.constant 0 : index
      %44 = vector.load %arg3[%c0_19, %c0_20] : memref<128x128xbf16, #tpu.memory_space<vmem>>, vector<128x128xbf16>
      %cst_21 = arith.constant dense<0.000000e+00> : vector<8x128xf32>
      %45 = tpu.matmul %43, %44, %cst_21 {dimension_numbers = #tpu.dot_dimension_numbers<[1], [0], [0], [1], [0, 0, 1, 1], [], []>} : vector<8x128xbf16>, vector<128x128xbf16>, vector<8x128xf32> -> vector<8x128xf32>
      %cst_22 = arith.constant dense<0.000000e+00> : vector<128xf32>
      %46 = vector.multi_reduction <add>, %45, %cst_22 [0] : vector<8x128xf32> to vector<128xf32>
      %47 = vector.shape_cast %46 : vector<128xf32> to vector<1x128xf32>
      %cst_23 = arith.constant 8.000000e+00 : f32
      %48 = vector.broadcast %cst_23 : f32 to vector<1x128xf32>
      %49 = arith.divf %47, %48 : vector<1x128xf32>
      %50 = vector.broadcast %49 : vector<1x128xf32> to vector<8x128xf32>
      %51 = arith.subf %45, %50 : vector<8x128xf32>
      %52 = arith.mulf %51, %51 : vector<8x128xf32>
      %cst_24 = arith.constant dense<0.000000e+00> : vector<128xf32>
      %53 = vector.multi_reduction <add>, %52, %cst_24 [0] : vector<8x128xf32> to vector<128xf32>
      %54 = vector.shape_cast %53 : vector<128xf32> to vector<1x128xf32>
      %cst_25 = arith.constant 8.000000e+00 : f32
      %55 = vector.broadcast %cst_25 : f32 to vector<1x128xf32>
      %56 = arith.divf %54, %55 : vector<1x128xf32>
      %cst_26 = arith.constant 9.99999974E-6 : f32
      %57 = vector.broadcast %cst_26 : f32 to vector<1x128xf32>
      %58 = arith.addf %56, %57 : vector<1x128xf32>
      %59 = math.rsqrt %58 : vector<1x128xf32>
      %60 = vector.broadcast %59 : vector<1x128xf32> to vector<8x128xf32>
      %61 = arith.mulf %51, %60 : vector<8x128xf32>
      %62 = vector.broadcast %16 : vector<1x128xf32> to vector<8x128xf32>
      %63 = arith.mulf %61, %62 : vector<8x128xf32>
      %64 = vector.broadcast %17 : vector<1x128xf32> to vector<8x128xf32>
      %65 = arith.addf %63, %64 : vector<8x128xf32>
      %c0_27 = arith.constant 0 : index
      %c0_28 = arith.constant 0 : index
      %66 = vector.load %arg5[%c0_27, %c0_28] : memref<8x128xf32, #tpu.memory_space<vmem>>, vector<8x128xf32>
      tpu.vector_store %arg5[%c0_27, %c0_28], %65 {strides = array<i32>} : memref<8x128xf32, #tpu.memory_space<vmem>>, vector<8x128xf32>,
    } else {
    }
    return
  }
  func.func @transform_0(%arg0: i32) -> (i32, i32) {
    %c0_i32 = arith.constant 0 : i32
    %c0_i32_0 = arith.constant 0 : i32
    return %c0_i32, %arg0 : i32, i32
  }
  func.func @transform_1(%arg0: i32) -> (i32, i32) {
    %c0_i32 = arith.constant 0 : i32
    %c0_i32_0 = arith.constant 0 : i32
    return %arg0, %c0_i32 : i32, i32
  }
  func.func @transform_2(%arg0: i32) -> (i32, i32) {
    %c0_i32 = arith.constant 0 : i32
    %c0_i32_0 = arith.constant 0 : i32
    %c0_i32_1 = arith.constant 0 : i32
    return %c0_i32, %c0_i32_0 : i32, i32
  }
  func.func @transform_3(%arg0: i32) -> (i32, i32) {
    %c0_i32 = arith.constant 0 : i32
    %c0_i32_0 = arith.constant 0 : i32
    %c0_i32_1 = arith.constant 0 : i32
    return %c0_i32, %c0_i32_0 : i32, i32
  }
  func.func @transform_4(%arg0: i32) -> (i32, i32) {
    %c0_i32 = arith.constant 0 : i32
    %c0_i32_0 = arith.constant 0 : i32
    %c0_i32_1 = arith.constant 0 : i32
    return %c0_i32, %c0_i32_0 : i32, i32
  }
}

</mosaic_0001>

<bundles_post_ra>
// kernel: tpu_custom_call.1
= control target key start
LH: loop header
LB: loop body
LE: loop exit
PB: predicated region body
PF: predicated region fallthrough
CT: control target
= control target key end

     0   :  { %9 = vsyncpa [#allocation4], 0  ;;  %s1641_s0 = inlined_call_operand.hbm [shape: bf16[8,1024], index: 0, kind: input, shape index: {}]   ;;  %s1642_s1 = inlined_call_operand.hbm [shape: bf16[1024,128], index: 1, kind: input, shape index: {}]   ;;  %s1643_s2 = inlined_call_operand.hbm [shape: bf16[128,128], index: 2, kind: input, shape index: {}]   ;;  %s1644_s3 = inlined_call_operand.hbm [shape: f32[8,128], index: 3, kind: input, shape index: {}]   ;;  %s1645_s4 = inlined_call_operand.hbm [shape: f32[8,128], index: 4, kind: output, shape index: {}]  }
   0x1   :  { %11 = vsyncpa [#allocation4 + $0x1], 0 }
   0x2   :  { %12 = vsyncpa [#allocation7], 0 }
   0x3   :  { %14 = vsyncpa [#allocation7 + $0x1], 0 }
   0x4   :  { %15 = vsyncpa [#allocation10], 0 }
   0x5   :  { %16 = vsyncpa [#allocation5], 0  ;;  %s1393_s15 = smov 0   ;;  %s1395_s16 = smov 0  }
   0x6   :  { %s1397_s17 = smov 0   ;;  %s1399_s18 = smov 0  }
   0x7 LB: > { %s1412_s19 = sadd.s32 4294967295, %s1356_s18   ;;  %p42_p0 = scmp.ne.s32.totalorder %s1348_s16, %s1344_s15  ;;  %s1356_s18 = sphi %s1399_s18, %s1663_s18   ;;  %s1352_s17 = sphi %s1397_s17, %s1662_s17   ;;  %s1348_s16 = sphi %s1395_s16, %s1661_s16   ;;  %s1344_s15 = sphi %s1393_s15, %s1660_s15  }
   0x8   : > { %p1646_p1 = scmp.eq.s32.totalorder %s1412_s19, 0  ;;  %p909_p2 = scmp.ge.s32.totalorder %s1356_s18, 1 }
   0x9   : > { %p142_p3 = scmp.lt.s32.totalorder %s1356_s18, 3  ;;  %s1358_s22 = smov [#allocation8]  }
   0xa   : > { %p1421_p5 = por %p1646_p1, %p42_p0  ;;  %s154_s23 = sshll.u32 %s1358_s22, 4  ;;  %s155_s23 = int_to_ptr.vmem [resolvable:$true] %s154_s23 }
   0xb   : > { %p1425_p6 = pnand %p909_p2, %p142_p3  ;;  %s1359_s25 = smov [#allocation9]  }
   0xc   : > { %s1649_s20 = scalar_select %p1421_p5, 1, 0 }
   0xd   : > { %s1650_s21 = scalar_select %p1425_p6, 1, 0 }
   0xe   : > { %p1065_p7 = pneg %p1425_p6  ;;  %s168_s26 = sshll.u32 %s1359_s25, 4  ;;  %s169_s26 = int_to_ptr.vmem [resolvable:$true] %s168_s26 }
   0xf   : > { %s1185_s27 = scalar_lea.vmem %s155_s23, 1024  ;;  %p1193_p13 = scmp.lt.s32.totalorder %s155_s23, %s155_s23 }
  0x10   : > { %p1433_p8 = pnand %p1065_p7, %p1646_p1  ;;  %p1186_p10 = scmp.ne.s32.totalorder %s155_s23, %s1185_s27 }
  0x11   : > { %p1194_p0 = scmp.lt.s32.totalorder %s1185_s27, %s1185_s27 }
  0x12   : > { %p1176_p9 = pneg %p1433_p8 }
  0x13   : > { %p1195_p2 = por %p1194_p0, %p1193_p13 }
  0x14   : > { %p1188_p11 = pnand %p1186_p10, %p1176_p9 }
  0x16   : > { %p1189_p12 = pneg %p1188_p11 }
  0x18   : > { %p1196_p3 = pnand %p1195_p2, %p1189_p12 }
  0x1a   : > { %1199 = shalt.err (!%p1196_p3)
}
  0x1b   : > { %s1360_s28 = smov 64   ;;  %s1361_s29 = smov 4  }
  0x1c   : > { %1068 = dma.hbm_to_vmem [thread:$0]  (!%p1433_p8), %s1643_s2, 1024, %s155_s23, [#allocation7], %s1360_s28, %s1360_s28, %s1361_s29  }
  0x1d   : > { %s1211_s6 = scalar_lea.vmem %s169_s26, 128  ;;  %p1219_p12 = scmp.lt.s32.totalorder %s169_s26, %s169_s26 }
  0x1e   : > { %p1212_p7 = scmp.ne.s32.totalorder %s169_s26, %s1211_s6  ;;  %p1220_p13 = scmp.lt.s32.totalorder %s1211_s6, %s1211_s6 }
  0x20   : > { %p1214_p10 = pnand %p1212_p7, %p1176_p9  ;;  %p1221_p0 = por %p1220_p13, %p1219_p12 }
  0x22   : > { %p1215_p11 = pneg %p1214_p10 }
  0x24   : > { %p1222_p2 = pnand %p1221_p0, %p1215_p11 }
  0x26   : > { %1225 = shalt.err (!%p1222_p2)
}
  0x27   : > { %1071 = dma.hbm_to_vmem [thread:$0]  (!%p1433_p8), %s1644_s3, 128, %s169_s26, [#allocation10]  }
  0x28   : > { %s1459_s9 = sadd.s32 1, %s1356_s18   ;;  %s29_s10 = sadd.s32 1, %s1352_s17 }
  0x29   : > { %s26_s11 = ssub.s32 %s1356_s18, %s1459_s9  ;;  %p36_p9 = scmp.ne.s32.totalorder %s1352_s17, %s1348_s16 }
  0x2a   : > { %p27_p3 = scmp.eq.s32.totalorder %s26_s11, 0  ;;  %p37_p7 = scmp.eq.s32.totalorder %s1356_s18, 0 }
  0x2b   : > { %p1081_p10 = scmp.lt.s32.totalorder %s1356_s18, 2  ;;  %s1469_s12 = sand.u32 1, %s1352_s17  }
  0x2c   : > { %s1472_s13 = scalar_select %p27_p3, %s1352_s17, %s29_s10  }
  0x2d   : > { %p38_p11 = por %p37_p7, %p36_p9  ;;  %s913_s14 = sshll.u32 %s1469_s12, 4 }
  0x2e   : > { %s974_s15 = sshll.u32 %s1356_s18, 8  ;;  %s183_s25 = scalar_lea.vmem [#allocation3], %s913_s14 }
  0x2f   : > { %s1479_s24 = scalar_lea.hbm %s1641_s0, %s974_s15  ;;  %s191_s26 = sshll.u32 %s183_s25, 4  ;;  %s192_s26 = int_to_ptr.vmem [resolvable:$true] %s191_s26 }
  0x30   : > { %p1481_p8 = pnand %p1081_p10, %p38_p11  ;;  %s916_s30 = sshll.u32 %s1469_s12, 8 }
  0x31   : > { %s180_s5 = scalar_lea.sflag [#allocation4], %s1469_s12  ;;  %s1226_s6 = scalar_lea.hbm %s1479_s24, 256 }
  0x32   : > { %p1227_p12 = scmp.ne.s32.totalorder %s1479_s24, %s1226_s6  ;;  %p1228_p13 = pneg %p1481_p8 }
  0x33   : > { %s1231_s10 = scalar_lea.hbm %s1641_s0, 512  ;;  %p1232_p9 = scmp.lt.s32.totalorder %s1479_s24, %s1641_s0 }
  0x34   : > { %p1229_p0 = pnand %p1228_p13, %p1227_p12  ;;  %p1233_p3 = scmp.lt.s32.totalorder %s1231_s10, %s1226_s6 }
  0x36   : > { %p1230_p2 = pneg %p1229_p0  ;;  %p1234_p7 = por %p1233_p3, %p1232_p9 }
  0x38   : > { %p1235_p10 = pnand %p1234_p7, %p1230_p2 }
  0x3a   : > { %1238 = shalt.err (!%p1235_p10)
}
  0x3b   : > { %s1239_s12 = scalar_lea.vmem %s192_s26, 256  ;;  %s1362_s15 = smov [#allocation3]  }
  0x3c   : > { %p1240_p11 = scmp.ne.s32.totalorder %s192_s26, %s1239_s12  ;;  %s1244_s22 = sshll.u32 %s1362_s15, 4  ;;  %s1245_s22 = int_to_ptr.vmem [resolvable:$false] %s1244_s22 }
  0x3d   : > { %s1246_s23 = scalar_lea.vmem %s1245_s22, 512  ;;  %p1247_p0 = scmp.lt.s32.totalorder %s192_s26, %s1245_s22 }
  0x3e   : > { %p1242_p4 = pnand %p1240_p11, %p1228_p13  ;;  %p1248_p1 = scmp.lt.s32.totalorder %s1246_s23, %s1239_s12 }
  0x40   : > { %p1243_p12 = pneg %p1242_p4  ;;  %p1249_p5 = por %p1248_p1, %p1247_p0 }
  0x42   : > { %p1250_p6 = pnand %p1249_p5, %p1243_p12 }
  0x44   : > { %1253 = shalt.err (!%p1250_p6)
}
  0x45   : > { %1075 = dma.hbm_to_vmem [thread:$0]  (!%p1481_p8), %s1479_s24, 256, %s192_s26, %s180_s5  }
  0x46   : > { %s202_s25 = scalar_lea.vmem [#allocation6], %s916_s30  ;;  %s198_s7 = sand.u32 1, %s1356_s18  }
  0x47   : > { %s209_s6 = sshll.u32 %s202_s25, 4  ;;  %s975_s8 = sshll.u32 %s1356_s18, 12  ;;  %s1508_s6 = int_to_ptr.vmem [resolvable:$true] %s209_s6 }
  0x48   : > { %s1514_s14 = scalar_lea.hbm %s1642_s1, %s975_s8  ;;  %s199_s12 = scalar_lea.sflag [#allocation7], %s198_s7 }
  0x49   : > { %s1254_s15 = scalar_lea.hbm %s1514_s14, 4096  ;;  %s1259_s30 = scalar_lea.hbm %s1642_s1, 8192 }
  0x4a   : > { %p1255_p1 = scmp.ne.s32.totalorder %s1514_s14, %s1254_s15  ;;  %p1260_p6 = scmp.lt.s32.totalorder %s1514_s14, %s1642_s1 }
  0x4b   : > { %p1261_p2 = scmp.lt.s32.totalorder %s1259_s30, %s1254_s15 }
  0x4c   : > { %p1257_p4 = pnand %p1255_p1, %p1228_p13 }
  0x4d   : > { %p1262_p9 = por %p1261_p2, %p1260_p6 }
  0x4e   : > { %p1258_p5 = pneg %p1257_p4 }
  0x50   : > { %p1263_p3 = pnand %p1262_p9, %p1258_p5 }
  0x52   : > { %1266 = shalt.err (!%p1263_p3)
}
  0x53   : > { %s1267_s22 = scalar_lea.vmem %s1508_s6, 4096  ;;  %s1363_s23 = smov [#allocation6]  }
  0x54   : > { %p1268_p7 = scmp.ne.s32.totalorder %s1508_s6, %s1267_s22  ;;  %s1272_s25 = sshll.u32 %s1363_s23, 4  ;;  %s1273_s25 = int_to_ptr.vmem [resolvable:$false] %s1272_s25 }
  0x55   : > { %s1274_s7 = scalar_lea.vmem %s1273_s25, 8192  ;;  %p1275_p12 = scmp.lt.s32.totalorder %s1508_s6, %s1273_s25 }
  0x56   : > { %p1270_p10 = pnand %p1268_p7, %p1228_p13  ;;  %p1276_p0 = scmp.lt.s32.totalorder %s1274_s7, %s1267_s22 }
  0x58   : > { %p1271_p11 = pneg %p1270_p10  ;;  %p1277_p1 = por %p1276_p0, %p1275_p12 }
  0x5a   : > { %p1278_p4 = pnand %p1277_p1, %p1271_p11 }
  0x5c   : > { %1281 = shalt.err (!%p1278_p4)
}
  0x5d   : > { %1078 = dma.hbm_to_vmem [thread:$0]  (!%p1481_p8), %s1514_s14, 4096, %s1508_s6, %s199_s12, %s1360_s28, %s1360_s28, %s1361_s29  }
  0x5e   : > { %p1653_p13 = scmp.ne.s32.totalorder %s1650_s21, 0 }
  0x5f   : > { %s223_s8 = sand.u32 (!%p1653_p13), 1, %s1348_s16   ;;  %p1654_p5 = scmp.ne.s32.totalorder (!%p1653_p13), %s1649_s20, 0 }
  0x60   : > { %221 = sbr.rel (%p1653_p13) target bundleno = 689 (0x2b1), region = 36  ;;  %s920_s10 = sshll.u32 (!%p1653_p13), %s223_s8, 4 }
  0x61   : > { %s224_s11 = scalar_lea.sflag (!%p1653_p13), [#allocation4], %s223_s8  ;;  %s1544_s15 = scalar_lea.vmem (!%p1653_p13), [#allocation3], %s920_s10 }
  0x65   : > { %1323 = dma.done.wait (%p1654_p5), %s224_s11, 256  }
  0x66   : > { %1325 = vsyncadd (%p1654_p5), %s224_s11, 4294967040  ;;  %s232_s27 = sand.u32 1, %s1412_s19   ;;  %s921_s24 = sshll.u32 %s223_s8, 8 }
  0x67   : > { %s233_s28 = scalar_lea.sflag [#allocation7], %s232_s27  ;;  %s1551_s29 = scalar_lea.vmem [#allocation6], %s921_s24 }
  0x68   : > { %1327 = dma.done.wait (%p1654_p5), %s233_s28, 4096  }
  0x69   : > { %1329 = vsyncadd (%p1654_p5), %s233_s28, 4294963200  ;;  %p1655_p8 = scmp.eq.s32.totalorder %s1412_s19, 0 }
  0x6b   : > { %1331 = dma.done.wait (%p1655_p8), [#allocation7], 1024   ;;  %p1656_p6 = pmov %p1655_p8 }
  0x6d   : > { %1333 = vsyncadd (%p1656_p6), [#allocation7], 4294966272  ;;  %p1657_p2 = pmov %p1656_p6 }
  0x6f   : > { %1335 = dma.done.wait (%p1657_p2), [#allocation10], 128   ;;  %p1658_p9 = pmov %p1657_p2 }
  0x70   : > { %p1659_p3 = scmp.ne.s32.totalorder %s1412_s19, 0 }
  0x71   : > { %1337 = vsyncadd (%p1658_p9), [#allocation10], 4294967168 }
  0x72   : > { %275 = sbr.rel (%p1659_p3) target bundleno = 121 (0x79), region = 56 }
  0x77   : > { %v1364_v0 = vmov 0.0  }
  0x78   : > { %276 = vst [vmem:[#allocation2] sm:$0xff] %v1364_v0 }
  0x79 PF: > { %v1126_v1 = vld [vmem:[%s1551_s29 + $0x78] sm:$0xff]   ;;  %v1130_v5 = vld [vmem:[%s1551_s29 + $0x70] sm:$0xff]   ;;  %v1134_v9 = vld [vmem:[%s1551_s29 + $0x68] sm:$0xff]   ;;  %p961_p7 = scmp.ne.s32.totalorder %s1412_s19, 1 }
  0x7a   : > { %v1127_v2 = vld [vmem:[%s1551_s29 + $0xf8] sm:$0xff]   ;;  %976 = vmatprep.subr.bf16.mxu0 %v1126_v1  ;;  %v1131_v6 = vld [vmem:[%s1551_s29 + $0xf0] sm:$0xff]   ;;  %v1135_v10 = vld [vmem:[%s1551_s29 + $0xe8] sm:$0xff]  }
  0x7b   : > { %v1128_v3 = vld [vmem:[%s1551_s29 + $0x38] sm:$0xff]   ;;  %998 = vmatprep.subr.bf16.mxu1 %v1127_v2  ;;  %v1132_v7 = vld [vmem:[%s1551_s29 + $0x30] sm:$0xff]   ;;  %v1136_v11 = vld [vmem:[%s1551_s29 + $0x28] sm:$0xff]  }
  0x7c   : > { %v1129_v4 = vld [vmem:[%s1551_s29 + $0xb8] sm:$0xff]   ;;  %977 = vmatpush3.bf16.msra.mxu0 %v1128_v3  ;;  %v1133_v8 = vld [vmem:[%s1551_s29 + $0xb0] sm:$0xff]   ;;  %v1137_v12 = vld [vmem:[%s1551_s29 + $0xa8] sm:$0xff]  }
  0x7d   : > { %999 = vmatpush3.bf16.msra.mxu1 %v1129_v4  ;;  %978 = vmatprep.subr.bf16.mxu0 %v1130_v5  ;;  %v1138_v13 = vld [vmem:[%s1551_s29 + $0x60] sm:$0xff]   ;;  %v1142_v17 = vld [vmem:[%s1551_s29 + $0x58] sm:$0xff]   ;;  %v1146_v21 = vld [vmem:[%s1551_s29 + $0x50] sm:$0xff]  }
  0x7e   : > { %1000 = vmatprep.subr.bf16.mxu1 %v1131_v6  ;;  %v1139_v14 = vld [vmem:[%s1551_s29 + $0xe0] sm:$0xff]   ;;  %v1143_v18 = vld [vmem:[%s1551_s29 + $0xd8] sm:$0xff]   ;;  %v1147_v22 = vld [vmem:[%s1551_s29 + $0xd0] sm:$0xff]  }
  0x7f   : > { %v1140_v15 = vld [vmem:[%s1551_s29 + $0x20] sm:$0xff]   ;;  %v1144_v19 = vld [vmem:[%s1551_s29 + $0x18] sm:$0xff]   ;;  %v1148_v23 = vld [vmem:[%s1551_s29 + $0x10] sm:$0xff]  }
  0x80   : > { %979 = vmatpush3.bf16.msra.mxu0 %v1132_v7  ;;  %v1141_v16 = vld [vmem:[%s1551_s29 + $0xa0] sm:$0xff]   ;;  %v1145_v20 = vld [vmem:[%s1551_s29 + $0x98] sm:$0xff]   ;;  %v1149_v24 = vld [vmem:[%s1551_s29 + $0x90] sm:$0xff]  }
  0x81   : > { %1001 = vmatpush3.bf16.msra.mxu1 %v1133_v8  ;;  %980 = vmatprep.subr.bf16.mxu0 %v1134_v9  ;;  %v1150_v25 = vld [vmem:[%s1551_s29 + $0x48] sm:$0xff]   ;;  %v1154_v29 = vld [vmem:[%s1551_s29 + $0x40] sm:$0xff]   ;;  %v277_v45 = vld [vmem:[#allocation2] sm:$0xff] }
  0x82   : > { %1002 = vmatprep.subr.bf16.mxu1 %v1135_v10  ;;  %v1151_v26 = vld [vmem:[%s1551_s29 + $0xc8] sm:$0xff]   ;;  %v1155_v30 = vld [vmem:[%s1551_s29 + $0xc0] sm:$0xff]  }
  0x83   : > { %v1152_v27 = vld [vmem:[%s1551_s29 + $0x8] sm:$0xff]   ;;  %v1156_v31 = vld [vmem:[%s1551_s29] sm:$0xff]  }
  0x84   : > { %981 = vmatpush3.bf16.msra.mxu0 %v1136_v11  ;;  %v1153_v28 = vld [vmem:[%s1551_s29 + $0x88] sm:$0xff]   ;;  %v1157_v32 = vld [vmem:[%s1551_s29 + $0x80] sm:$0xff]  }
  0x85   : > { %1003 = vmatpush3.bf16.msra.mxu1 %v1137_v12  ;;  %982 = vmatprep.subr.bf16.mxu0 %v1138_v13  ;;  %v278_v33 = vld [vmem:[%s1544_s15] sm:$0xff]  ;;  %v279_v34 = vld [vmem:[%s1544_s15 + $0x8] sm:$0xff] }
  0x86   : > { %1004 = vmatprep.subr.bf16.mxu1 %v1139_v14  ;;  %v925_v35 = vcombine.low %v278_v33, %v278_v33  ;;  %v926_v36 = vcombine.high %v278_v33, %v278_v33  ;;  %v927_v37 = vcombine.low %v279_v34, %v279_v34  ;;  %v928_v38 = vcombine.high %v279_v34, %v279_v34 }
  0x88   : > { %983 = vmatpush3.bf16.msra.mxu0 %v1140_v15  ;;  %582 = vmatprep.mubr.bf16.mxu0 %v926_v36 }
  0x89   : > { %1005 = vmatpush3.bf16.msra.mxu1 %v1141_v16  ;;  %984 = vmatprep.subr.bf16.mxu0 %v1142_v17 }
  0x8a   : > { %1006 = vmatprep.subr.bf16.mxu1 %v1143_v18  ;;  %622 = vmatprep.mubr.bf16.mxu1 %v928_v38 }
  0x8c   : > { %985 = vmatpush3.bf16.msra.mxu0 %v1144_v19 }
  0x8d   : > { %1007 = vmatpush3.bf16.msra.mxu1 %v1145_v20  ;;  %986 = vmatprep.subr.bf16.mxu0 %v1146_v21 }
  0x8e   : > { %1008 = vmatprep.subr.bf16.mxu1 %v1147_v22 }
  0x90   : > { %987 = vmatpush3.bf16.msra.mxu0 %v1148_v23 }
  0x91   : > { %1009 = vmatpush3.bf16.msra.mxu1 %v1149_v24  ;;  %988 = vmatprep.subr.bf16.mxu0 %v1150_v25 }
  0x92   : > { %1010 = vmatprep.subr.bf16.mxu1 %v1151_v26 }
  0x94   : > { %989 = vmatpush3.bf16.msra.mxu0 %v1152_v27 }
  0x95   : > { %1011 = vmatpush3.bf16.msra.mxu1 %v1153_v28  ;;  %990 = vmatprep.subr.bf16.mxu0 %v1154_v29 }
  0x96   : > { %1012 = vmatprep.subr.bf16.mxu1 %v1155_v30 }
  0x98   : > { %991 = vmatpush3.bf16.msra.mxu0 %v1156_v31 }
  0x99   : > { %1013 = vmatpush3.bf16.msra.mxu1 %v1157_v32 }
  0x9b   : > { %583 = vmatmul.mubr.bf16.vlgmr.msra.gmra.mxu0 %v925_v35 }
  0x9c   : > { %623 = vmatmul.mubr.bf16.vlgmr.msra.gmra.mxu1 %v927_v37 }
 0x15b   : > { %v992_v39 = vpop.f32.mrf.mxu0 }
 0x15c   : > { %v1014_v40 = vpop.f32.mrf.mxu1 }
 0x15d   : > { %v993_v41 = vpop.f32.mrf.mxu0 }
 0x15e   : > { %v1015_v42 = vpop.f32.mrf.mxu1  ;;  %v994_v43 = vadd.f32 %v993_v41, %v992_v39 }
 0x15f   : > { %v1016_v44 = vadd.f32 %v1015_v42, %v1014_v40  ;;  %v995_v46 = vpop.f32.mrf.mxu0 }
 0x160   : > { %v1017_v47 = vpop.f32.mrf.mxu1 }
 0x161   : > { %v625_v48 = vadd.f32 %v1016_v44, %v994_v43  ;;  %v996_v49 = vpop.f32.mrf.mxu0  ;;  %635 = sbr.rel (%p961_p7) target bundleno = 674 (0x2a2), region = 60 }
 0x162   : > { %v1018_v50 = vpop.f32.mrf.mxu1 }
 0x163   : > { %v630_v51 = vadd.f32 %v625_v48, %v277_v45 }
 0x165   : > { %631 = vst [vmem:[#allocation2] sm:$0xff] %v630_v51 }
 0x166   : > { %v1162_v52 = vld [vmem:[#allocation8 + $0x38] sm:$0xff]   ;;  %v638_v53 = vlaneseq  ;;  %v1365_v54 = vmov 0.0   ;;  %v1163_v55 = vld [vmem:[#allocation8 + $0x30] sm:$0xff]   ;;  %vm1366_vm0 = vmmov 0   ;;  %v1164_v58 = vld [vmem:[#allocation8 + $0x28] sm:$0xff]  }
 0x167   : > { %1029 = vmatprep.subr.bf16.mxu0 %v1365_v54  ;;  %1045 = vmatprep.mubr.msk.bf16.mxu0 %vm1366_vm0, %v1365_v54  ;;  %v1605_v59 = vld [vmem:[#allocation9] sm:$0xff]  ;;  %v1166_v1 = vld [vmem:[#allocation8 + $0x18] sm:$0xff]   ;;  %v1167_v4 = vld [vmem:[#allocation8 + $0x10] sm:$0xff]  }
 0x168   : > { %1030 = vmatpush3.bf16.msra.mxu0 %v1162_v52  ;;  %v1602_v56 = vshrl.u32 %v638_v53, 7  ;;  %v1165_v62 = vld [vmem:[#allocation8 + $0x20] sm:$0xff]   ;;  %v1168_v7 = vld [vmem:[#allocation8 + $0x8] sm:$0xff]  }
 0x169   : > { %1031 = vmatprep.subr.bf16.mxu0 %v1365_v54  ;;  %v1169_v10 = vld [vmem:[#allocation8] sm:$0xff]  }
 0x16a   : > { %v640_v57 = vsub.s32 0, %v1602_v56  ;;  %v665_v21 = vsub.s32 1, %v1602_v56  ;;  %v670_v22 = vsub.s32 2, %v1602_v56  ;;  %v800_v52 = vsub.s32 3, %v1602_v56 }
 0x16b   : > { %v805_v53 = vsub.s32 4, %v1602_v56 }
 0x16c   : > { %1032 = vmatpush3.bf16.msra.mxu0 %v1163_v55  ;;  %v637_v60 = vld [vmem:[#allocation2] sm:$0xff]  ;;  %v641_v61 = vrot.slane %v1605_v59, %v640_v57  ;;  %v666_v23 = vrot.slane %v1605_v59, %v665_v21  ;;  %v671_v26 = vrot.slane %v1605_v59, %v670_v22 }
 0x16d   : > { %1033 = vmatprep.subr.bf16.mxu0 %v1365_v54 }
 0x16e   : > { %v642_v63 = vadd.f32 %v641_v61, %v637_v60 }
 0x170   : > { %1034 = vmatpush3.bf16.msra.mxu0 %v1164_v58  ;;  %v643_v0 = vrot.slane %v642_v63, 4  ;;  %v806_v58 = vrot.slane %v1605_v59, %v805_v53 }
 0x171   : > { %1035 = vmatprep.subr.bf16.mxu0 %v1365_v54 }
 0x172   : > { %v644_v2 = vadd.f32 %v643_v0, %v642_v63 }
 0x174   : > { %1036 = vmatpush3.bf16.msra.mxu0 %v1165_v62  ;;  %v645_v3 = vrot.slane %v644_v2, 2 }
 0x175   : > { %1037 = vmatprep.subr.bf16.mxu0 %v1365_v54 }
 0x176   : > { %v646_v5 = vadd.f32 %v645_v3, %v644_v2 }
 0x178   : > { %1038 = vmatpush3.bf16.msra.mxu0 %v1166_v1  ;;  %v647_v6 = vrot.slane %v646_v5, 1 }
 0x179   : > { %1039 = vmatprep.subr.bf16.mxu0 %v1365_v54 }
 0x17a   : > { %v648_v8 = vadd.f32 %v647_v6, %v646_v5 }
 0x17c   : > { %1040 = vmatpush3.bf16.msra.mxu0 %v1167_v4  ;;  %v650_v9 = vmul.f32 0.125, %v648_v8 }
 0x17d   : > { %1041 = vmatprep.subr.bf16.mxu0 %v1365_v54 }
 0x17e   : > { %v651_v11 = vsub.f32 %v642_v63, %v650_v9 }
 0x180   : > { %1042 = vmatpush3.bf16.msra.mxu0 %v1168_v7  ;;  %v652_v12 = vmul.f32 %v651_v11, %v651_v11 }
 0x181   : > { %1043 = vmatprep.subr.bf16.mxu0 %v1365_v54  ;;  %v801_v54 = vrot.slane %v1605_v59, %v800_v52 }
 0x182   : > { %v653_v13 = vrot.slane %v652_v12, 4 }
 0x184   : > { %1044 = vmatpush3.bf16.msra.mxu0 %v1169_v10  ;;  %v654_v14 = vadd.f32 %v653_v13, %v652_v12 }
 0x186   : > { %v655_v15 = vrot.slane %v654_v14, 2 }
 0x188   : > { %v656_v16 = vadd.f32 %v655_v15, %v654_v14 }
 0x18a   : > { %v657_v17 = vrot.slane %v656_v16, 1 }
 0x18c   : > { %v658_v18 = vadd.f32 %v657_v17, %v656_v16 }
 0x18e   : > { %v659_v19 = vmul.f32 0.125, %v658_v18 }
 0x190   : > { %v660_v20 = vadd.f32 1e-05, %v659_v19 }
 0x192   : > { %1170 = vrsqrt.f32 %v660_v20 }
 0x19f   : > { %v1171_v24 = vpop.eup %1170 }
 0x1a0   : > { %v662_v25 = vmul.f32 %v1171_v24, %v651_v11 }
 0x1a2   : > { %v667_v27 = vmul.f32 %v666_v23, %v662_v25 }
 0x1a4   : > { %v672_v28 = vadd.f32 %v671_v26, %v667_v27 }
 0x1a6   : > { %v673_v29 = vmax.f32 %v672_v28, 0.0 }
 0x1a8   : > { %v674_v30 = vpack.c.bf16 %v673_v29, %v673_v29 }
 0x1aa   : > { %1046 = vmatmul.mubr.bf16.vlgmr.msra.gmra.mxu0 %v674_v30 }
 0x26a   : > { %v773_v31 = vpop.f32.mrf.mxu0 }
 0x26b   : > { %v779_v32 = vrot.slane %v773_v31, 4 }
 0x26c   : > { %v1047_v33 = vpop.f32.mrf.mxu0 }
 0x26d   : > { %v780_v34 = vadd.f32 %v779_v32, %v773_v31 }
 0x26e   : > { %v776_v35 = vpop.f32.mrf.mxu0 }
 0x26f   : > { %v781_v36 = vrot.slane %v780_v34, 2 }
 0x270   : > { %v1048_v37 = vpop.f32.mrf.mxu0 }
 0x271   : > { %v782_v38 = vadd.f32 %v781_v36, %v780_v34 }
 0x273   : > { %v783_v39 = vrot.slane %v782_v38, 1 }
 0x275   : > { %v784_v40 = vadd.f32 %v783_v39, %v782_v38 }
 0x277   : > { %v785_v41 = vmul.f32 0.125, %v784_v40 }
 0x279   : > { %v786_v42 = vsub.f32 %v773_v31, %v785_v41 }
 0x27b   : > { %v787_v43 = vmul.f32 %v786_v42, %v786_v42 }
 0x27d   : > { %v788_v44 = vrot.slane %v787_v43, 4 }
 0x27f   : > { %v789_v45 = vadd.f32 %v788_v44, %v787_v43 }
 0x281   : > { %v790_v46 = vrot.slane %v789_v45, 2 }
 0x283   : > { %v791_v47 = vadd.f32 %v790_v46, %v789_v45 }
 0x285   : > { %v792_v48 = vrot.slane %v791_v47, 1 }
 0x287   : > { %v793_v49 = vadd.f32 %v792_v48, %v791_v47 }
 0x289   : > { %v794_v50 = vmul.f32 0.125, %v793_v49 }
 0x28b   : > { %v795_v51 = vadd.f32 1e-05, %v794_v50 }
 0x28d   : > { %1172 = vrsqrt.f32 %v795_v51 }
 0x29a   : > { %v1173_v55 = vpop.eup %1172 }
 0x29b   : > { %v797_v57 = vmul.f32 %v1173_v55, %v786_v42 }
 0x29d   : > { %v802_v60 = vmul.f32 %v801_v54, %v797_v57 }
 0x29f   : > { %v807_v61 = vadd.f32 %v806_v58, %v802_v60 }
 0x2a1   : > { %808 = vst [vmem:[#allocation11] sm:$0xff] %v807_v61 }
 0x2a2 PF: > { %p1084_p10 = scmp.eq.s32.totalorder %s1412_s19, 1  ;;  %s1367_s20 = smov [#allocation11]  }
 0x2a3   : > { %s816_s21 = sshll.u32 %s1367_s20, 4  ;;  %s817_s21 = int_to_ptr.vmem [resolvable:$true] %s816_s21 }
 0x2a4   : > { %s1282_s6 = scalar_lea.vmem %s817_s21, 128  ;;  %p1289_p1 = scmp.lt.s32.totalorder %s817_s21, %s817_s21 }
 0x2a5   : > { %p1283_p11 = scmp.ne.s32.totalorder %s817_s21, %s1282_s6  ;;  %p1290_p4 = scmp.lt.s32.totalorder %s1282_s6, %s1282_s6 }
 0x2a7   : > { %p1284_p12 = pnand %p1283_p11, %p1084_p10  ;;  %p1291_p13 = por %p1290_p4, %p1289_p1 }
 0x2a9   : > { %p1285_p0 = pneg %p1284_p12 }
 0x2ab   : > { %p1292_p5 = pnand %p1291_p13, %p1285_p0 }
 0x2ad   : > { %1295 = shalt.err (!%p1292_p5)
}
 0x2ae   : > { %1062 = dma.vmem_to_hbm [thread:$0]  (%p1084_p10), %s817_s21, 128, %s1645_s4, [#allocation5]  }
 0x2af   : > { %1339 = dma.done.wait (%p1084_p10), [#allocation5], 128  }
 0x2b0   : > { %1341 = vsyncadd (%p1084_p10), [#allocation5], 4294967168 }
 0x2b1 PF: > { %p19_p8 = scmp.ge.s32.totalorder %s1459_s9, 4   ;;  %s1660_s15 = smov %s1348_s16 }
 0x2b2   : > { %s1661_s16 = smov %s1352_s17  ;;  %s1662_s17 = smov %s1472_s13 }
 0x2b3   : > { %s1663_s18 = smov %s1459_s9  ;;  %21 = sbr.rel (!%p19_p8) target bundleno = 7 (0x7), region = 102 }
 0x2b8   :  { %829 = vsyncpa [#allocation4], 1 }
 0x2b9   :  { %831 = vsyncpa [#allocation4 + $0x1], 1 }
 0x2ba   :  { %832 = vsyncpa [#allocation7], 1 }
 0x2bb   :  { %834 = vsyncpa [#allocation7 + $0x1], 1 }
 0x2bc   :  { %835 = vsyncpa [#allocation10], 1 }
 0x2bd   :  { %836 = vsyncpa [#allocation5], 1 }
 0x2be   :  { %838 = vsyncpa [#allocation5 + $0x1], 1 }

</bundles_post_ra>
